<compile_context>
chip_gen: v6e
topology: v6e:2x2x1
jax: 0.10.0
libtpu: 0.0.40
codegen_flags: <defaults>
</compile_context>

<pallas_src>
import functools

import jax
import jax.numpy as jnp
from jax.experimental import pallas as pl
from jax.experimental.pallas import tpu as pltpu

HIDDEN = 120       # fc1 output width in the PyTorch module
HIDDEN_PAD = 128   # lane-dense padded hidden width (also rows of the fused fc2·fc3 block)


def _net_kernel(x_ref, w_ref, o_ref, *, in_size, out_size):
    # Packed weight slab layout (all f32):
    #   rows [0, in_size)            -> w1.T, hidden padded 120 -> 128 lanes
    #   rows [in_size, in_size+128)  -> (w2.T @ w3.T), padded to 128 x 128
    # Static slices of the ref are free (no data movement).
    # fc1 (no bias): MXU matmul, f32 accumulate; ReLU on the VPU.
    h = jnp.dot(x_ref[...], w_ref[:in_size, :], preferred_element_type=jnp.float32)
    h = jnp.maximum(h, 0.0)            # second ReLU in the module is a no-op -> dropped
    # Fused fc2·fc3 (no nonlinearity between them) -> one matmul.
    logits = jnp.dot(h, w_ref[in_size:, :], preferred_element_type=jnp.float32)
    # Padded lanes must not contribute to the softmax max/denominator (logits stay f32,
    # so exp(-1e30 - m) underflows to exactly 0).
    lane = jax.lax.broadcasted_iota(jnp.int32, logits.shape, 1)
    logits = jnp.where(lane < out_size, logits, jnp.float32(-1e30))
    # Numerically stable softmax over dim=1, exact division (perf-free in this regime).
    m = jnp.max(logits, axis=1, keepdims=True)
    e = jnp.exp(logits - m)
    probs = e / jnp.sum(e, axis=1, keepdims=True)
    # Store only the real output columns; the masked store on 8 rows is negligible here.
    o_ref[...] = probs[:, :out_size].astype(o_ref.dtype)


def prepare_params(w1, w2, w3):
    """One-time parameter prep (NOT per forward call): transpose, fuse fc2·fc3,
    zero-pad hidden 120->128 / output->128, and pack both weights into ONE f32 slab
    so the kernel needs a single weight DMA."""
    in_size = int(w1.shape[1])
    out_size = int(w3.shape[0])
    w1t = w1.T.astype(jnp.float32)                               # (in, 120)
    w23t = w2.T.astype(jnp.float32) @ w3.T.astype(jnp.float32)   # (120, out)
    slab = jnp.zeros((in_size + HIDDEN_PAD, HIDDEN_PAD), jnp.float32)
    slab = slab.at[:in_size, :HIDDEN].set(w1t)
    slab = slab.at[in_size:in_size + HIDDEN, :out_size].set(w23t)
    return slab, in_size, out_size


@functools.partial(jax.jit, static_argnames=("in_size", "out_size"))
def net_forward(x, w_slab, *, in_size, out_size):
    """x: (B, in_size) f32; w_slab: (in_size + 128, 128) f32 packed weights."""
    B = x.shape[0]
    vmem = pl.BlockSpec(memory_space=pltpu.VMEM)
    flops = 2 * B * (in_size * HIDDEN_PAD + HIDDEN_PAD * HIDDEN_PAD)
    bytes_accessed = 4 * (x.size + w_slab.size + B * out_size)
    # Grid-less single call: working set ~80 KB, far under VMEM on v5e/v6e/v7x.
    # TODO(synk): if ever called with a large fused batch, add a parallel batch grid axis
    # (dimension_semantics=("parallel",)) to use v7x's second TensorCore.
    return pl.pallas_call(
        functools.partial(_net_kernel, in_size=in_size, out_size=out_size),
        out_shape=jax.ShapeDtypeStruct((B, out_size), jnp.float32),
        in_specs=[vmem, vmem],
        out_specs=vmem,
        cost_estimate=pl.CostEstimate(
            flops=flops,
            transcendentals=B * HIDDEN_PAD,
            bytes_accessed=bytes_accessed),
    )(x, w_slab)


def reference_forward(x, w1, w2, w3):
    h = jnp.maximum(x @ w1.T, 0.0)
    h = jnp.maximum(h, 0.0)
    h = h @ w2.T
    h = h @ w3.T
    return jax.nn.softmax(h, axis=1)


if __name__ == "__main__":
    input_size = 32
    output_size = 16
    batch = 8

    key = jax.random.PRNGKey(0)
    kx, k1, k2, k3 = jax.random.split(key, 4)

    x = jax.random.normal(kx, (batch, input_size), dtype=jnp.float32)
    # nn.Linear weight shapes (out_features, in_features), no bias.
    w1 = jax.random.normal(k1, (HIDDEN, input_size), dtype=jnp.float32) * 0.1
    w2 = jax.random.normal(k2, (output_size, HIDDEN), dtype=jnp.float32) * 0.1
    w3 = jax.random.normal(k3, (output_size, output_size), dtype=jnp.float32) * 0.1

    # One-time weight prep (hoisted out of the per-call path).
    w_slab, in_size, out_size = prepare_params(w1, w2, w3)

    out = net_forward(x, w_slab, in_size=in_size, out_size=out_size)
    jax.block_until_ready(out)

    ref = reference_forward(x, w1, w2, w3)
    assert out.shape == (batch, output_size)
    # f32 operands + exact division -> tight tolerances (fc2·fc3 fusion only reorders f32 ops).
    assert jnp.allclose(out, ref, atol=1e-3, rtol=1e-2)
    assert jnp.allclose(jnp.sum(out, axis=1), 1.0, atol=1e-5)

    print("KERNEL_OK")
</pallas_src>

<mosaic_0001>
module attributes {stable_mosaic.version = 11 : i64} {
  func.func @_net_kernel(%arg0: memref<8x32xf32, #tpu.memory_space<vmem>>, %arg1: memref<160x128xf32, #tpu.memory_space<vmem>>, %arg2: memref<8x16xf32, #tpu.memory_space<vmem>>) attributes {dimension_semantics = [], scalar_prefetch = 0 : i64, scratch_operands = 0 : i64, tpu.core_type = #tpu.core_type<tc>} {
    %c0 = arith.constant 0 : index
    %c0_0 = arith.constant 0 : index
    %0 = vector.load %arg0[%c0, %c0_0] : memref<8x32xf32, #tpu.memory_space<vmem>>, vector<8x32xf32>
    %c0_1 = arith.constant 0 : index
    %c0_2 = arith.constant 0 : index
    %1 = vector.load %arg1[%c0_1, %c0_2] : memref<160x128xf32, #tpu.memory_space<vmem>>, vector<32x128xf32>
    %cst = arith.constant dense<0.000000e+00> : vector<8x128xf32>
    %2 = tpu.matmul %0, %1, %cst {dimension_numbers = #tpu.dot_dimension_numbers<[1], [0], [0], [1], [0, 0, 1, 1], [], []>} : vector<8x32xf32>, vector<32x128xf32>, vector<8x128xf32> -> vector<8x128xf32>
    %cst_3 = arith.constant 0.000000e+00 : f32
    %3 = vector.broadcast %cst_3 : f32 to vector<8x128xf32>
    %4 = arith.maximumf %2, %3 : vector<8x128xf32>
    %c32 = arith.constant 32 : index
    %c0_4 = arith.constant 0 : index
    %5 = vector.load %arg1[%c32, %c0_4] : memref<160x128xf32, #tpu.memory_space<vmem>>, vector<128x128xf32>
    %cst_5 = arith.constant dense<0.000000e+00> : vector<8x128xf32>
    %6 = tpu.matmul %4, %5, %cst_5 {dimension_numbers = #tpu.dot_dimension_numbers<[1], [0], [0], [1], [0, 0, 1, 1], [], []>} : vector<8x128xf32>, vector<128x128xf32>, vector<8x128xf32> -> vector<8x128xf32>
    %7 = tpu.iota {dimensions = array<i32: 1>} : vector<8x128xi32>
    %c16_i32 = arith.constant 16 : i32
    %8 = vector.broadcast %c16_i32 : i32 to vector<8x128xi32>
    %9 = arith.cmpi slt, %7, %8 : vector<8x128xi32>
    %cst_6 = arith.constant -1.000000e+30 : f32
    %10 = vector.broadcast %cst_6 : f32 to vector<8x128xf32>
    %11 = arith.select %9, %6, %10 : vector<8x128xi1>, vector<8x128xf32>
    %cst_7 = arith.constant dense<0xFF800000> : vector<8xf32>
    %12 = vector.multi_reduction <maximumf>, %11, %cst_7 [1] : vector<8x128xf32> to vector<8xf32>
    %13 = vector.shape_cast %12 : vector<8xf32> to vector<8x1xf32>
    %14 = vector.broadcast %13 : vector<8x1xf32> to vector<8x128xf32>
    %15 = arith.subf %11, %14 : vector<8x128xf32>
    %16 = math.exp %15 : vector<8x128xf32>
    %cst_8 = arith.constant dense<0.000000e+00> : vector<8xf32>
    %17 = vector.multi_reduction <add>, %16, %cst_8 [1] : vector<8x128xf32> to vector<8xf32>
    %18 = vector.shape_cast %17 : vector<8xf32> to vector<8x1xf32>
    %19 = vector.broadcast %18 : vector<8x1xf32> to vector<8x128xf32>
    %20 = arith.divf %16, %19 : vector<8x128xf32>
    %21 = vector.extract_strided_slice %20 {offsets = [0, 0], sizes = [8, 16], strides = [1, 1]} : vector<8x128xf32> to vector<8x16xf32>
    %c0_9 = arith.constant 0 : index
    %c0_10 = arith.constant 0 : index
    %22 = vector.load %arg2[%c0_9, %c0_10] : memref<8x16xf32, #tpu.memory_space<vmem>>, vector<8x16xf32>
    tpu.vector_store %arg2[%c0_9, %c0_10], %21 {strides = array<i32>} : memref<8x16xf32, #tpu.memory_space<vmem>>, vector<8x16xf32>,
    return
  }
}

</mosaic_0001>

<bundles_post_ra>
// kernel: net_forward.1
= control target key start
LH: loop header
LB: loop body
LE: loop exit
PB: predicated region body
PF: predicated region fallthrough
CT: control target
= control target key end

     0   :  { %7 = vsyncpa [#allocation3], 0  ;;  %s434_s0 = inlined_call_operand.hbm [shape: f32[8,32], index: 0, kind: input, shape index: {}]   ;;  %s435_s1 = inlined_call_operand.hbm [shape: f32[160,128], index: 1, kind: input, shape index: {}]   ;;  %s436_s2 = inlined_call_operand.hbm [shape: f32[8,16], index: 2, kind: output, shape index: {}]  }
   0x1   :  { %8 = vsyncpa [#allocation6], 0 }
   0x2   :  { %9 = vsyncpa [#allocation4], 0  ;;  %s381_s9 = smov [#allocation2]   ;;  %s382_s11 = smov [#allocation5]  }
   0x3   :  { %s16_s10 = sshll.u32 %s381_s9, 4  ;;  %s25_s12 = sshll.u32 %s382_s11, 4  ;;  %s17_s10 = int_to_ptr.vmem [resolvable:$true] %s16_s10  ;;  %s26_s12 = int_to_ptr.vmem [resolvable:$true] %s25_s12 }
   0x4   :  { %s323_s13 = scalar_lea.vmem %s17_s10, 128  ;;  %p328_p1 = scmp.lt.s32.totalorder %s17_s10, %s17_s10 }
   0x5   :  { %p324_p0 = scmp.ne.s32.totalorder %s17_s10, %s323_s13  ;;  %p329_p2 = scmp.lt.s32.totalorder %s323_s13, %s323_s13 }
   0x7   :  { %p330_p3 = por %p329_p2, %p328_p1 }
   0x9   :  { %p331_p4 = pnand %p330_p3, %p324_p0 }
   0xb   :  { %334 = shalt.err (!%p331_p4)
}
   0xc   :  { %19 = dma.hbm_to_vmem [thread:$0]  %s434_s0, 128, %s17_s10, [#allocation3]  }
   0xd   :  { %s343_s16 = scalar_lea.vmem %s26_s12, 2560  ;;  %p348_p6 = scmp.lt.s32.totalorder %s26_s12, %s26_s12 }
   0xe   :  { %p344_p5 = scmp.ne.s32.totalorder %s26_s12, %s343_s16  ;;  %p349_p7 = scmp.lt.s32.totalorder %s343_s16, %s343_s16 }
  0x10   :  { %p350_p8 = por %p349_p7, %p348_p6 }
  0x12   :  { %p351_p9 = pnand %p350_p8, %p344_p5 }
  0x14   :  { %354 = shalt.err (!%p351_p9)
}
  0x15   :  { %s383_s17 = smov 128   ;;  %s384_s18 = smov 8  }
  0x16   :  { %31 = dma.hbm_to_vmem [thread:$0]  %s435_s1, 2560, %s26_s12, [#allocation6], %s383_s17, %s383_s17, %s384_s18  }
  0x17   :  { %375 = dma.done.wait [#allocation3], 128  }
  0x18   :  { %376 = vsyncadd [#allocation3], 4294967168 }
  0x19   :  { %377 = dma.done.wait [#allocation6], 2560  }
  0x1a   :  { %378 = vsyncadd [#allocation6], 4294964736  ;;  %v385_v0 = vmov 0.0   ;;  %vm386_vm0 = vmmov 0   ;;  %v42_v1 = vld [vmem:[#allocation5 + $0x18] sm:$0xff]  ;;  %v41_v2 = vld [vmem:[#allocation5 + $0x10] sm:$0xff]  ;;  %v204_v25 = vlaneseq }
  0x1b   :  { %258 = vmatprep.subr.mxu0 %v385_v0  ;;  %266 = vmatprep.mubr.msk.f32.mxu0 %vm386_vm0, %v385_v0  ;;  %v133_v3 = vld [vmem:[#allocation5 + $0x98] sm:$0xff]  ;;  %v40_v4 = vld [vmem:[#allocation5 + $0x8] sm:$0xff]  ;;  %v132_v5 = vld [vmem:[#allocation5 + $0x90] sm:$0xff]  ;;  %vm43_vm1 = vcmask 261120   ;;  %s387_s0 = smov [#allocation7]   ;;  %vm217_vm3 = vcmask 130048  }
  0x1c   :  { %269 = vmatprep.subr.mxu1 %v385_v0  ;;  %301 = vmatprep.mubr.msk.f32.mxu1 %vm386_vm0, %v385_v0  ;;  %v131_v6 = vld [vmem:[#allocation5 + $0x88] sm:$0xff]  ;;  %v39_v7 = vld [vmem:[#allocation5] sm:$0xff]  ;;  %v38_v8 = vld [vmem:[#allocation2] sm:$0xff]  ;;  %v205_v26 = vand.u32 127, %v204_v25  ;;  %s225_s1 = sshll.u32 %s387_s0, 4  ;;  %s226_s1 = int_to_ptr.vmem [resolvable:$true] %s225_s1 }
  0x1d   :  { %259 = vmatpush3.msra.mxu0 %v42_v1  ;;  %270 = vmatpush3.msra.mxu1 %v133_v3  ;;  %v130_v9 = vld [vmem:[#allocation5 + $0x80] sm:$0xff]  ;;  %v129_v10 = vld [vmem:[#allocation5 + $0x78] sm:$0xff]  ;;  %v128_v11 = vld [vmem:[#allocation5 + $0x70] sm:$0xff]  ;;  %s355_s21 = scalar_lea.vmem %s226_s1, 128  ;;  %p360_p11 = scmp.lt.s32.totalorder %s226_s1, %s226_s1 }
  0x1e   :  { %260 = vmatprep.subr.mxu0 %v385_v0  ;;  %271 = vmatprep.subr.mxu1 %v385_v0  ;;  %v127_v12 = vld [vmem:[#allocation5 + $0x68] sm:$0xff]  ;;  %v126_v13 = vld [vmem:[#allocation5 + $0x60] sm:$0xff]  ;;  %v125_v14 = vld [vmem:[#allocation5 + $0x58] sm:$0xff]  ;;  %vm206_vm2 = vcmp.lt.s32.totalorder %v205_v26, 16  ;;  %p356_p10 = scmp.ne.s32.totalorder %s226_s1, %s355_s21  ;;  %p361_p12 = scmp.lt.s32.totalorder %s355_s21, %s355_s21 }
  0x1f   :  { %261 = vmatpush3.msra.mxu0 %v41_v2  ;;  %272 = vmatpush3.msra.mxu1 %v132_v5  ;;  %v124_v15 = vld [vmem:[#allocation5 + $0x50] sm:$0xff]  ;;  %v123_v16 = vld [vmem:[#allocation5 + $0x48] sm:$0xff]  ;;  %v122_v17 = vld [vmem:[#allocation5 + $0x40] sm:$0xff] }
  0x20   :  { %262 = vmatprep.subr.mxu0 %v385_v0  ;;  %273 = vmatprep.subr.mxu1 %v385_v0  ;;  %v121_v18 = vld [vmem:[#allocation5 + $0x38] sm:$0xff]  ;;  %v120_v19 = vld [vmem:[#allocation5 + $0x30] sm:$0xff]  ;;  %v119_v20 = vld [vmem:[#allocation5 + $0x28] sm:$0xff]  ;;  %p362_p13 = por %p361_p12, %p360_p11 }
  0x21   :  { %263 = vmatpush3.msra.mxu0 %v40_v4  ;;  %274 = vmatpush3.msra.mxu1 %v131_v6  ;;  %v118_v21 = vld [vmem:[#allocation5 + $0x20] sm:$0xff] }
  0x22   :  { %264 = vmatprep.subr.mxu0 %v385_v0  ;;  %275 = vmatprep.subr.mxu1 %v385_v0  ;;  %p363_p0 = pnand %p362_p13, %p356_p10 }
  0x23   :  { %265 = vmatpush3.msra.mxu0 %v39_v7  ;;  %276 = vmatpush3.msra.mxu1 %v130_v9 }
  0x24   :  { %267 = vmatmul.mubr.msk.f32.vlgmr.msra.gmra.mxu0 %vm43_vm1, %v38_v8  ;;  %277 = vmatprep.subr.mxu1 %v385_v0 }
  0x25   :  { %278 = vmatpush3.msra.mxu1 %v129_v10 }
  0x26   :  { %279 = vmatprep.subr.mxu1 %v385_v0 }
  0x27   :  { %280 = vmatpush3.msra.mxu1 %v128_v11 }
  0x28   :  { %281 = vmatprep.subr.mxu1 %v385_v0 }
  0x29   :  { %282 = vmatpush3.msra.mxu1 %v127_v12 }
  0x2a   :  { %283 = vmatprep.subr.mxu1 %v385_v0 }
  0x2b   :  { %284 = vmatpush3.msra.mxu1 %v126_v13 }
  0x2c   :  { %285 = vmatprep.subr.mxu1 %v385_v0 }
  0x2d   :  { %286 = vmatpush3.msra.mxu1 %v125_v14 }
  0x2e   :  { %287 = vmatprep.subr.mxu1 %v385_v0 }
  0x2f   :  { %288 = vmatpush3.msra.mxu1 %v124_v15 }
  0x30   :  { %289 = vmatprep.subr.mxu1 %v385_v0 }
  0x31   :  { %290 = vmatpush3.msra.mxu1 %v123_v16 }
  0x32   :  { %291 = vmatprep.subr.mxu1 %v385_v0 }
  0x33   :  { %292 = vmatpush3.msra.mxu1 %v122_v17 }
  0x34   :  { %293 = vmatprep.subr.mxu1 %v385_v0 }
  0x35   :  { %294 = vmatpush3.msra.mxu1 %v121_v18 }
  0x36   :  { %295 = vmatprep.subr.mxu1 %v385_v0 }
  0x37   :  { %296 = vmatpush3.msra.mxu1 %v120_v19 }
  0x38   :  { %297 = vmatprep.subr.mxu1 %v385_v0 }
  0x39   :  { %298 = vmatpush3.msra.mxu1 %v119_v20 }
  0x3a   :  { %299 = vmatprep.subr.mxu1 %v385_v0 }
  0x3b   :  { %300 = vmatpush3.msra.mxu1 %v118_v21 }
  0xe4   :  { %v113_v22 = vpop.f32.mrf.mxu0 }
  0xe5   :  { %v117_v23 = vmax.f32 %v113_v22, 0.0 }
  0xe6   :  { %v268_v24 = vpop.f32.mrf.mxu0 }
  0xe7   :  { %302 = vmatmul.mubr.f32.vlgmr.msra.gmra.mxu1 %v117_v23 }
 0x1a7   :  { %v200_v27 = vpop.f32.mrf.mxu1 }
 0x1a8   :  { %v207_v28 = vsel %vm206_vm2, %v200_v27, -1e+30 }
 0x1a9   :  { %208 = vmax.xlane.f32.xlu0 %v207_v28  ;;  %v303_v29 = vpop.f32.mrf.mxu1 }
 0x232   :  { %v209_v30 = vpop.xlane.xlu0 %208 }
 0x233   :  { %v210_v31 = vsub.f32 %v207_v28, %v209_v30 }
 0x235   :  { %v211_v32 = vmul.f32 1.442695, %v210_v31 }
 0x237   :  { %311 = vpow2.f32 %v211_v32 }
 0x244   :  { %v312_v33 = vpop.eup %311 }
 0x245   :  { %213 = vadd.xlane.f32.xlu0 %v312_v33 }
 0x2ce   :  { %v214_v34 = vpop.xlane.xlu0 %213 }
 0x2cf   :  { %313 = vrcp.f32 %v214_v34 }
 0x2dc   :  { %v314_v35 = vpop.eup %313 }
 0x2dd   :  { %v216_v36 = vmul.f32 %v314_v35, %v312_v33 }
 0x2df   :  { %218 = vst.msk [vmem:[#allocation7] sm:$0xff] %vm217_vm3, %v216_v36 }
 0x2e0   :  { %366 = shalt.err (!%p363_p0)
}
 0x2e1   :  { %228 = dma.vmem_to_hbm [thread:$0]  %s226_s1, 128, %s436_s2, [#allocation4]  }
 0x2e2   :  { %379 = dma.done.wait [#allocation4], 128  }
 0x2e3   :  { %380 = vsyncadd [#allocation4], 4294967168 }
 0x2e4   :  { %232 = vsyncpa [#allocation3], 1 }
 0x2e5   :  { %233 = vsyncpa [#allocation6], 1 }
 0x2e6   :  { %234 = vsyncpa [#allocation4], 1 }

</bundles_post_ra>
